<compile_context>
chip_gen: v7x
topology: tpu7x:2x2x1
jax: 0.10.0
libtpu: 0.0.40
codegen_flags: <defaults>
</compile_context>

<pallas_src>
import numpy as np
import jax
import jax.numpy as jnp
from jax.experimental import pallas as pl
from jax.experimental.pallas import tpu as pltpu


# ---------------------------------------------------------------------------
# Exact linear operators for adaptive avg-pool and bilinear (align_corners=False)
# ---------------------------------------------------------------------------
def _adaptive_pool_matrix(in_size: int, out_size: int) -> np.ndarray:
    """(out_size, in_size) matrix M so that pooled = M @ x (PyTorch AdaptiveAvgPool rule)."""
    m = np.zeros((out_size, in_size), dtype=np.float32)
    for p in range(out_size):
        start = (p * in_size) // out_size
        end = -(-((p + 1) * in_size) // out_size)  # ceil
        m[p, start:end] = 1.0 / (end - start)
    return m


def _bilinear_matrix(out_size: int, in_size: int) -> np.ndarray:
    """(out_size, in_size) matrix U so that out = U @ x, PyTorch bilinear, align_corners=False."""
    m = np.zeros((out_size, in_size), dtype=np.float32)
    scale = in_size / out_size
    for i in range(out_size):
        src = (i + 0.5) * scale - 0.5
        src = max(src, 0.0)                 # PyTorch clamps negative src to 0
        p0 = min(int(np.floor(src)), in_size - 1)
        p1 = min(p0 + 1, in_size - 1)
        lam = src - p0
        m[i, p0] += 1.0 - lam
        m[i, p1] += lam
    return m


# ---------------------------------------------------------------------------
# Tile-size selection (shape-adaptive, sized for the 64 MiB VMEM of v7x)
# ---------------------------------------------------------------------------
def _choose_tc(C: int, HW: int, budget_bytes: int = 8 << 20) -> int:
    """Channel tile: must divide C and satisfy layout rules (tc == C or 128 | tc).
    Target: f32 x block (tc * HW * 4B) <= budget, so 2x double-buffering stays
    well inside the v7x 64 MiB VMEM."""
    if C % 128 != 0 or C * HW * 4 <= budget_bytes:
        return C
    best = 128
    t = 256
    while t <= C:
        if C % t == 0 and t * HW * 4 <= budget_bytes:
            best = t
        t += 128
    return best


def _choose_thw(HW: int, cap: int = 2048) -> int:
    """Spatial tile for the upsample/store phase: multiple of 128 dividing HW."""
    if HW % 128 != 0:
        return HW
    best = 128
    t = 128
    while t <= min(HW, cap):
        if HW % t == 0:
            best = t
        t += 128
    return best


# ---------------------------------------------------------------------------
# Phase 1: adaptive pool + fused 1x1 conv/BN + ReLU, channel-tiled reduction
# ---------------------------------------------------------------------------
def _pool_conv_kernel(x_ref, pool_ref, w_ref, b_ref, y_ref, acc_ref):
    c = pl.program_id(1)

    @pl.when(c == 0)
    def _():
        acc_ref[...] = jnp.zeros_like(acc_ref)

    # Cast f32 -> bf16 in-kernel (VPU work hidden under DMA; avoids an extra
    # HBM pass that a wrapper-side x.astype(bf16) would cost).
    x_tile = x_ref[0].astype(jnp.bfloat16)
    # adaptive average pool of this channel tile: (tc, HW) @ (HW, PP) -> (tc, PP)
    pooled = jnp.dot(x_tile, pool_ref[...], preferred_element_type=jnp.float32)
    # partial fused 1x1 conv (+BN scale): (K, tc) @ (tc, PP), accumulated over C tiles
    acc_ref[...] += jnp.dot(w_ref[...], pooled.astype(w_ref.dtype),
                            preferred_element_type=jnp.float32)

    @pl.when(c == pl.num_programs(1) - 1)
    def _():
        y_ref[0] = jnp.maximum(acc_ref[...] + b_ref[...], 0.0).astype(y_ref.dtype)


# ---------------------------------------------------------------------------
# Phase 2: bilinear upsample, lane-dense spatial output tiles
# ---------------------------------------------------------------------------
def _upsample_kernel(y_ref, up_ref, o_ref):
    # (K, PP) @ (PP, thw) -> (K, thw), exact f32 interpolation of the phase-1 result
    o_ref[0] = jnp.dot(y_ref[0], up_ref[...],
                       preferred_element_type=jnp.float32).astype(o_ref.dtype)


def psp_block(x, conv_w, conv_b, bn_gamma, bn_beta, bn_mean, bn_var,
              pool_size: int, use_batchnorm: bool, eps: float = 1e-5):
    """PSPBlock forward. x: (N, C, H, W) float32. Returns (N, K, H, W) float32."""
    N, C, H, W = x.shape
    K = conv_w.shape[0]
    P = pool_size
    HW, PP = H * W, P * P

    # Dense Kronecker operators (exact PyTorch semantics).
    # TODO(synk): a separable (A_h @ x @ A_w^T) form would avoid holding the full
    # (HW, PP) operator in VMEM for very large spatial maps; kept dense since the
    # kernel is HBM-bound at typical PSP feature-map sizes.
    pool_mat = jnp.asarray(
        np.kron(_adaptive_pool_matrix(H, P), _adaptive_pool_matrix(W, P)).T,
        dtype=jnp.bfloat16)                                           # (HW, PP)
    up_mat = jnp.asarray(
        np.kron(_bilinear_matrix(H, P), _bilinear_matrix(W, P)).T,
        dtype=jnp.float32)                                            # (PP, HW)

    # Fold eval-mode BatchNorm into the 1x1 conv (conv_b ignored when BN is on,
    # matching PyTorch's bias=False).
    w2d = conv_w.reshape(K, C).astype(jnp.float32)
    if use_batchnorm:
        scale = bn_gamma / jnp.sqrt(bn_var + eps)
        w_fused = w2d * scale[:, None]
        b_fused = bn_beta - scale * bn_mean
    else:
        w_fused = w2d
        b_fused = conv_b
    w_fused = w_fused.astype(jnp.bfloat16)
    b_fused = b_fused.reshape(K, 1).astype(jnp.float32)

    # Free reshape (contiguous); x stays f32 in HBM — no wrapper-side cast pass.
    x_flat = x.reshape(N, C, HW)

    tc = _choose_tc(C, HW)
    n_ct = C // tc
    thw = _choose_thw(HW)
    n_hwt = HW // thw

    vmem_limit = 48 * 1024 * 1024   # explicit budget; fits v7x's 64 MiB VMEM

    # ---- phase 1: pool + conv/BN + ReLU -> tiny (N, K, PP) activation (f32) ----
    # TODO(synk): for very small C/HW several batch elements could share one grid
    # step to amortize per-step overhead; not needed at production PSP shapes.
    y = pl.pallas_call(
        _pool_conv_kernel,
        out_shape=jax.ShapeDtypeStruct((N, K, PP), jnp.float32),
        grid_spec=pltpu.PrefetchScalarGridSpec(
            num_scalar_prefetch=0,
            grid=(N, n_ct),
            in_specs=[
                pl.BlockSpec((1, tc, HW), lambda n, c: (n, c, 0)),   # x channel tile (f32)
                pl.BlockSpec((HW, PP), lambda n, c: (0, 0)),         # pooling operator
                pl.BlockSpec((K, tc), lambda n, c: (0, c)),          # fused conv weight tile
                pl.BlockSpec((K, 1), lambda n, c: (0, 0)),           # fused bias
            ],
            out_specs=pl.BlockSpec((1, K, PP), lambda n, c: (n, 0, 0)),
            scratch_shapes=[pltpu.VMEM((K, PP), jnp.float32)],
        ),
        compiler_params=pltpu.CompilerParams(
            dimension_semantics=("parallel", "arbitrary"),
            vmem_limit_bytes=vmem_limit),
    )(x_flat, pool_mat, w_fused, b_fused)

    # ---- phase 2: bilinear upsample with lane-dense (multiple-of-128) output tiles ----
    out_flat = pl.pallas_call(
        _upsample_kernel,
        out_shape=jax.ShapeDtypeStruct((N, K, HW), x.dtype),
        grid_spec=pltpu.PrefetchScalarGridSpec(
            num_scalar_prefetch=0,
            grid=(N, n_hwt),
            in_specs=[
                pl.BlockSpec((1, K, PP), lambda n, h: (n, 0, 0)),    # pooled activation
                pl.BlockSpec((PP, thw), lambda n, h: (0, h)),        # upsample operator tile
            ],
            out_specs=pl.BlockSpec((1, K, thw), lambda n, h: (n, 0, h)),
        ),
        compiler_params=pltpu.CompilerParams(
            dimension_semantics=("parallel", "parallel"),
            vmem_limit_bytes=vmem_limit),
    )(y, up_mat)

    return out_flat.reshape(N, K, H, W)


# ---------------------------------------------------------------------------
# Plain-JAX f32 reference (for a sanity check)
# ---------------------------------------------------------------------------
def psp_block_ref(x, conv_w, conv_b, bn_gamma, bn_beta, bn_mean, bn_var,
                  pool_size: int, use_batchnorm: bool, eps: float = 1e-5):
    N, C, H, W = x.shape
    K = conv_w.shape[0]
    P = pool_size
    a_h = jnp.asarray(_adaptive_pool_matrix(H, P))
    a_w = jnp.asarray(_adaptive_pool_matrix(W, P))
    pooled = jnp.einsum('ph,qw,nchw->ncpq', a_h, a_w, x)
    z = jnp.einsum('kc,ncpq->nkpq', conv_w.reshape(K, C), pooled)
    if use_batchnorm:
        scale = bn_gamma / jnp.sqrt(bn_var + eps)
        z = z * scale[None, :, None, None] + (bn_beta - scale * bn_mean)[None, :, None, None]
    else:
        z = z + conv_b[None, :, None, None]
    z = jnp.maximum(z, 0.0)
    u_h = jnp.asarray(_bilinear_matrix(H, P))
    u_w = jnp.asarray(_bilinear_matrix(W, P))
    return jnp.einsum('ip,jq,nkpq->nkij', u_h, u_w, z)


if __name__ == "__main__":
    # Small shapes consistent with the module: NCHW input, pool_size=4 (=> BN used)
    N, C, K, H, W = 2, 4, 8, 16, 16
    pool_size = 4
    use_batchnorm = True  # pool_size != 1 -> Conv2dReLU uses BatchNorm, conv has no bias

    key = jax.random.PRNGKey(0)
    kx, kw = jax.random.split(key)
    x = jax.random.normal(kx, (N, C, H, W), dtype=jnp.float32)

    # Deterministic parameter init (Conv2d 1x1 kaiming-uniform-like range, fresh BN stats).
    bound = 1.0 / np.sqrt(C)
    conv_w = jax.random.uniform(kw, (K, C, 1, 1), minval=-bound, maxval=bound, dtype=jnp.float32)
    conv_b = jnp.zeros((K,), jnp.float32)          # unused when BN is on
    bn_gamma = jnp.ones((K,), jnp.float32)
    bn_beta = jnp.zeros((K,), jnp.float32)
    bn_mean = jnp.zeros((K,), jnp.float32)
    bn_var = jnp.ones((K,), jnp.float32)
    # TODO(synk): BatchNorm is applied in eval mode (running stats); training-mode batch
    # statistics are not reproduced here.

    out = psp_block(x, conv_w, conv_b, bn_gamma, bn_beta, bn_mean, bn_var,
                    pool_size, use_batchnorm)
    out = jax.block_until_ready(out)

    ref = psp_block_ref(x, conv_w, conv_b, bn_gamma, bn_beta, bn_mean, bn_var,
                        pool_size, use_batchnorm)
    assert out.shape == (N, K, H, W)
    # bf16 x/weights/pool-operator (f32 accumulation) -> relaxed tolerance vs. f32 reference.
    np.testing.assert_allclose(np.asarray(out), np.asarray(ref), rtol=3e-2, atol=1e-2)

    print("KERNEL_OK")
</pallas_src>

<mosaic_0001>
module attributes {stable_mosaic.version = 11 : i64} {
  func.func @_pool_conv_kernel(%arg0: i32, %arg1: i32, %arg2: memref<1x4x256xf32, #tpu.memory_space<vmem>>, %arg3: memref<256x16xbf16, #tpu.memory_space<vmem>>, %arg4: memref<8x4xbf16, #tpu.memory_space<vmem>>, %arg5: memref<8x1xf32, #tpu.memory_space<vmem>>, %arg6: memref<1x8x16xf32, #tpu.memory_space<vmem>>, %arg7: memref<8x16xf32, #tpu.memory_space<vmem>>) attributes {dimension_semantics = [#tpu.dimension_semantics<parallel>, #tpu.dimension_semantics<arbitrary>], iteration_bounds = array<i64: 2, 1>, scalar_prefetch = 0 : i64, scratch_operands = 1 : i64, tpu.core_type = #tpu.core_type<tc>, window_params = [{transform_indices = @transform_0, window_bounds = array<i64: 1, 4, 256>}, {pipeline_mode = #tpu.pipeline_mode<synchronous>, transform_indices = @transform_1, window_bounds = array<i64: 256, 16>}, {transform_indices = @transform_2, window_bounds = array<i64: 8, 4>}, {pipeline_mode = #tpu.pipeline_mode<synchronous>, transform_indices = @transform_3, window_bounds = array<i64: 8, 1>}, {transform_indices = @transform_4, window_bounds = array<i64: 1, 8, 16>}]} {
    %c0_i32 = arith.constant 0 : i32
    %0 = arith.cmpi eq, %arg1, %c0_i32 : i32
    %1 = arith.extui %0 : i1 to i32
    %c0_i32_0 = arith.constant 0 : i32
    %2 = arith.cmpi ne, %1, %c0_i32_0 : i32
    scf.if %2 {
      %cst_14 = arith.constant 0.000000e+00 : f32
      %17 = vector.broadcast %cst_14 : f32 to vector<8x16xf32>
      %c0_15 = arith.constant 0 : index
      %c0_16 = arith.constant 0 : index
      %18 = vector.load %arg7[%c0_15, %c0_16] : memref<8x16xf32, #tpu.memory_space<vmem>>, vector<8x16xf32>
      tpu.vector_store %arg7[%c0_15, %c0_16], %17 {strides = array<i32>} : memref<8x16xf32, #tpu.memory_space<vmem>>, vector<8x16xf32>,
    } else {
    }
    %c0 = arith.constant 0 : index
    %c0_1 = arith.constant 0 : index
    %c0_2 = arith.constant 0 : index
    %3 = vector.load %arg2[%c0, %c0_1, %c0_2] : memref<1x4x256xf32, #tpu.memory_space<vmem>>, vector<1x4x256xf32>
    %4 = vector.shape_cast %3 : vector<1x4x256xf32> to vector<4x256xf32>
    %5 = arith.truncf %4 : vector<4x256xf32> to vector<4x256xbf16>
    %c0_3 = arith.constant 0 : index
    %c0_4 = arith.constant 0 : index
    %6 = vector.load %arg3[%c0_3, %c0_4] : memref<256x16xbf16, #tpu.memory_space<vmem>>, vector<256x16xbf16>
    %cst = arith.constant dense<0.000000e+00> : vector<4x16xf32>
    %7 = tpu.matmul %5, %6, %cst {dimension_numbers = #tpu.dot_dimension_numbers<[1], [0], [0], [1], [0, 0, 1, 1], [], []>} : vector<4x256xbf16>, vector<256x16xbf16>, vector<4x16xf32> -> vector<4x16xf32>
    %c0_5 = arith.constant 0 : index
    %c0_6 = arith.constant 0 : index
    %8 = vector.load %arg7[%c0_5, %c0_6] : memref<8x16xf32, #tpu.memory_space<vmem>>, vector<8x16xf32>
    %c0_7 = arith.constant 0 : index
    %c0_8 = arith.constant 0 : index
    %9 = vector.load %arg4[%c0_7, %c0_8] : memref<8x4xbf16, #tpu.memory_space<vmem>>, vector<8x4xbf16>
    %10 = arith.truncf %7 : vector<4x16xf32> to vector<4x16xbf16>
    %cst_9 = arith.constant dense<0.000000e+00> : vector<8x16xf32>
    %11 = tpu.matmul %9, %10, %cst_9 {dimension_numbers = #tpu.dot_dimension_numbers<[1], [0], [0], [1], [0, 0, 1, 1], [], []>} : vector<8x4xbf16>, vector<4x16xbf16>, vector<8x16xf32> -> vector<8x16xf32>
    %12 = arith.addf %8, %11 : vector<8x16xf32>
    %c0_10 = arith.constant 0 : index
    %c0_11 = arith.constant 0 : index
    %13 = vector.load %arg7[%c0_10, %c0_11] : memref<8x16xf32, #tpu.memory_space<vmem>>, vector<8x16xf32>
    tpu.vector_store %arg7[%c0_10, %c0_11], %12 {strides = array<i32>} : memref<8x16xf32, #tpu.memory_space<vmem>>, vector<8x16xf32>,
    %c0_i32_12 = arith.constant 0 : i32
    %14 = arith.cmpi eq, %arg1, %c0_i32_12 : i32
    %15 = arith.extui %14 : i1 to i32
    %c0_i32_13 = arith.constant 0 : i32
    %16 = arith.cmpi ne, %15, %c0_i32_13 : i32
    scf.if %16 {
      %c0_14 = arith.constant 0 : index
      %c0_15 = arith.constant 0 : index
      %17 = vector.load %arg7[%c0_14, %c0_15] : memref<8x16xf32, #tpu.memory_space<vmem>>, vector<8x16xf32>
      %c0_16 = arith.constant 0 : index
      %c0_17 = arith.constant 0 : index
      %18 = vector.load %arg5[%c0_16, %c0_17] : memref<8x1xf32, #tpu.memory_space<vmem>>, vector<8x1xf32>
      %19 = vector.broadcast %18 : vector<8x1xf32> to vector<8x16xf32>
      %20 = arith.addf %17, %19 : vector<8x16xf32>
      %cst_18 = arith.constant 0.000000e+00 : f32
      %21 = vector.broadcast %cst_18 : f32 to vector<8x16xf32>
      %22 = arith.maximumf %20, %21 : vector<8x16xf32>
      %c0_19 = arith.constant 0 : index
      %c0_20 = arith.constant 0 : index
      %c0_21 = arith.constant 0 : index
      %23 = vector.load %arg6[%c0_19, %c0_20, %c0_21] : memref<1x8x16xf32, #tpu.memory_space<vmem>>, vector<1x8x16xf32>
      %24 = vector.shape_cast %23 : vector<1x8x16xf32> to vector<8x16xf32>
      %25 = vector.shape_cast %22 : vector<8x16xf32> to vector<1x8x16xf32>
      tpu.vector_store %arg6[%c0_19, %c0_20, %c0_21], %25 {strides = array<i32>} : memref<1x8x16xf32, #tpu.memory_space<vmem>>, vector<1x8x16xf32>,
    } else {
    }
    return
  }
  func.func @transform_0(%arg0: i32, %arg1: i32) -> (i32, i32, i32) {
    %c0_i32 = arith.constant 0 : i32
    %c0_i32_0 = arith.constant 0 : i32
    return %arg0, %arg1, %c0_i32 : i32, i32, i32
  }
  func.func @transform_1(%arg0: i32, %arg1: i32) -> (i32, i32) {
    %c0_i32 = arith.constant 0 : i32
    %c0_i32_0 = arith.constant 0 : i32
    %c0_i32_1 = arith.constant 0 : i32
    return %c0_i32, %c0_i32_0 : i32, i32
  }
  func.func @transform_2(%arg0: i32, %arg1: i32) -> (i32, i32) {
    %c0_i32 = arith.constant 0 : i32
    %c0_i32_0 = arith.constant 0 : i32
    return %c0_i32, %arg1 : i32, i32
  }
  func.func @transform_3(%arg0: i32, %arg1: i32) -> (i32, i32) {
    %c0_i32 = arith.constant 0 : i32
    %c0_i32_0 = arith.constant 0 : i32
    %c0_i32_1 = arith.constant 0 : i32
    return %c0_i32, %c0_i32_0 : i32, i32
  }
  func.func @transform_4(%arg0: i32, %arg1: i32) -> (i32, i32, i32) {
    %c0_i32 = arith.constant 0 : i32
    %c0_i32_0 = arith.constant 0 : i32
    %c0_i32_1 = arith.constant 0 : i32
    return %arg0, %c0_i32, %c0_i32_0 : i32, i32, i32
  }
}

</mosaic_0001>

<bundles_post_ra>
// kernel: tpu_custom_call.1
= control target key start
LH: loop header
LB: loop body
LE: loop exit
PB: predicated region body
PF: predicated region fallthrough
CT: control target
= control target key end

     0   :  { %9 = vsyncpa [#allocation4], 0  ;;  %s1007_s0 = inlined_call_operand.vmem [shape: f32[2,4,256], index: 0, kind: input, shape index: {}]   ;;  %s1008_s1 = inlined_call_operand.vmem [shape: bf16[256,16], index: 1, kind: input, shape index: {}]   ;;  %s1009_s2 = inlined_call_operand.vmem [shape: bf16[8,4], index: 2, kind: input, shape index: {}]   ;;  %s1010_s3 = inlined_call_operand.vmem [shape: f32[8,1], index: 3, kind: input, shape index: {}]   ;;  %s1011_s4 = inlined_call_operand.hbm [shape: f32[2,8,16], index: 4, kind: output, shape index: {}]  }
   0x1   :  { %11 = vsyncpa [#allocation4 + $0x1], 0  ;;  %s838_s15 = smov 0   ;;  %s840_s16 = smov 0  }
   0x2   :  { %s842_s17 = smov 0   ;;  %s844_s18 = smov 0  }
   0x3   :  { %s846_s19 = smov 0   ;;  %s848_s20 = smov 0  }
   0x4 LB: > { %s592_s21 = sadd.s32 4294967295, %s807_s20   ;;  %s593_s22 = sadd.s32 4294967294, %s807_s20   ;;  %s807_s20 = sphi %s848_s20, %s17_s20   ;;  %s803_s19 = sphi %s846_s19, %s1018_s19   ;;  %s799_s18 = sphi %s844_s18, %s1017_s18   ;;  %s795_s17 = sphi %s842_s17, %s1016_s17   ;;  %s791_s16 = sphi %s840_s16, %s1015_s16   ;;  %s787_s15 = sphi %s838_s15, %s1014_s15  }
   0x5   : > { %s29_s23 = sadd.s32 1, %s803_s19  ;;  %s132_s24 = sadd.s32 1, %s795_s17 }
   0x6   : > { %p31_p0 = scmp.ge.s32.totalorder %s29_s23, 2  ;;  %p142_p1 = scmp.ne.s32.totalorder %s795_s17, %s791_s16 }
   0x7   : > { %p143_p2 = scmp.eq.s32.totalorder %s592_s21, 1  ;;  %p148_p3 = scmp.ne.s32.totalorder %s791_s16, %s787_s15 }
   0x8   : > { %s1020_s23 = smov (%p31_p0, %s29_s23), 0  ;;  %p149_p5 = scmp.eq.s32.totalorder %s593_s22, 1 }
   0x9   : > { %p878_p4 = por %p143_p2, %p142_p1  ;;  %s129_s26 = ssub.s32 %s803_s19, %s1020_s23 }
   0xa   : > { %p597_p6 = scmp.ge.s32.totalorder %s807_s20, 1  ;;  %p130_p7 = scmp.eq.s32.totalorder %s129_s26, 0 }
   0xb   : > { %p885_p8 = por %p149_p5, %p148_p3  ;;  %p192_p9 = scmp.lt.s32.totalorder %s807_s20, 3 }
   0xc   : > { %s891_s28 = scalar_select %p130_p7, %s795_s17, %s132_s24  }
   0xd   : > { %p193_p10 = pnand %p597_p6, %p192_p9 }
   0xe   : > { %v712_v0 = vld [vmem:[%s1008_s1 + $0x40] sm:$0xff] (!%p193_p10)   ;;  %v714_v2 = vld [vmem:[%s1008_s1 + $0x48] sm:$0xff] (!%p193_p10)   ;;  %p226_p11 = scmp.lt.s32.totalorder (!%p193_p10), %s799_s18, 1  ;;  %v716_v4 = vld [vmem:[%s1008_s1 + $0x50] sm:$0xff] (!%p193_p10)   ;;  %vm244_vm0 = vcmask (!%p193_p10), 130048   ;;  %v809_v20 = vmov (!%p193_p10), 0.0  }
   0xf   : > { %196 = sbr.rel (%p193_p10) target bundleno = 508 (0x1fc), region = 36  ;;  %v713_v1 = vld [vmem:[%s1008_s1] sm:$0xff] (!%p193_p10)   ;;  %623 = vmatprep.subr.bf16.mxu0 (!%p193_p10), %v712_v0  ;;  %v715_v3 = vld [vmem:[%s1008_s1 + $0x8] sm:$0xff] (!%p193_p10)   ;;  %v717_v5 = vld [vmem:[%s1008_s1 + $0x10] sm:$0xff] (!%p193_p10)   ;;  %245 = vst.msk [vmem:[#allocation2] sm:$0xff] (!%p193_p10), %vm244_vm0, %v809_v20  ;;  %647 = vmatprep.subr.bf16.mxu1 (!%p193_p10), %v809_v20  ;;  %vm810_vm1 = vmmov (!%p193_p10), 0  }
  0x10   : > { %624 = vmatpush3.bf16.msra.mxu0 (!%p193_p10), %v713_v1  ;;  %v718_v6 = vld [vmem:[%s1008_s1 + $0x58] sm:$0xff] (!%p193_p10)   ;;  %v720_v8 = vld [vmem:[%s1008_s1 + $0x60] sm:$0xff] (!%p193_p10)   ;;  %v722_v10 = vld [vmem:[%s1008_s1 + $0x68] sm:$0xff] (!%p193_p10)   ;;  %649 = vmatprep.mubr.msk.bf16.mxu1 (!%p193_p10), %vm810_vm1, %v809_v20  ;;  %v811_v22 = vmov (!%p193_p10), 0   ;;  %vm427_vm2 = vcmask (!%p193_p10), 1041408   ;;  %vm423_vm3 = vcmask (!%p193_p10), 31744  }
  0x11   : > { %625 = vmatprep.subr.bf16.mxu0 (!%p193_p10), %v714_v2  ;;  %v719_v7 = vld [vmem:[%s1008_s1 + $0x18] sm:$0xff] (!%p193_p10)   ;;  %v721_v9 = vld [vmem:[%s1008_s1 + $0x20] sm:$0xff] (!%p193_p10)   ;;  %v723_v13 = vld [vmem:[%s1008_s1 + $0x28] sm:$0xff] (!%p193_p10)   ;;  %711 = vset.pattern.permute.xlu0 (!%p193_p10), %v811_v22  ;;  %s223_s12 = sand.u32 (!%p193_p10), 1, %s791_s16   ;;  %s619_s14 = sshll.u32 (!%p193_p10), %s799_s18, 7 }
  0x12   : > { %v724_v15 = vld [vmem:[%s1008_s1 + $0x70] sm:$0xff] (!%p193_p10)   ;;  %v726_v17 = vld [vmem:[%s1008_s1 + $0x78] sm:$0xff] (!%p193_p10)   ;;  %v478_v21 = vld [vmem:[%s1010_s3] sm:$0xff] (!%p193_p10)  ;;  %s959_s29 = scalar_lea.hbm (!%p193_p10), %s1011_s4, %s619_s14  ;;  %s488_s30 = scalar_lea.sflag (!%p193_p10), [#allocation4], %s223_s12 }
  0x13   : > { %v725_v16 = vld [vmem:[%s1008_s1 + $0x30] sm:$0xff] (!%p193_p10)   ;;  %v727_v18 = vld [vmem:[%s1008_s1 + $0x38] sm:$0xff] (!%p193_p10)   ;;  %481 = vperm.xlu0 (!%p193_p10), %711, %v478_v21   ;;  %v421_v30 = vld [vmem:[%s1009_s2] sm:$0xf] (!%p193_p10) }
  0x14   : > { %626 = vmatpush3.bf16.msra.mxu0 (!%p193_p10), %v715_v3 }
  0x15   : > { %627 = vmatprep.subr.bf16.mxu0 (!%p193_p10), %v716_v4 }
  0x16   : > { %s227_s13 = scalar_select %p226_p11, %s799_s18, 1  ;;  %v420_v31 = vld [vmem:[#allocation2] sm:$0xff] }
  0x17   : > { %s812_s18 = smov [#allocation3]  }
  0x18   : > { %s622_s26 = sshll.u32 %s227_s13, 3  ;;  %628 = vmatpush3.bf16.msra.mxu0 %v717_v5  ;;  %s598_s13 = sshll.u32 %s223_s12, 3 }
  0x19   : > { %629 = vmatprep.subr.bf16.mxu0 %v718_v6  ;;  %s234_s9 = scalar_lea.vmem %s1007_s0, %s622_s26  ;;  %s225_s21 = scalar_lea.vmem [#allocation3], %s598_s13 }
  0x1a   : > { %v246_v11 = vld [vmem:[%s234_s9] sm:$0xff]  ;;  %s501_s22 = sshll.u32 %s225_s21, 4  ;;  %s733_s6 = sshll.u32 %s812_s18, 4  ;;  %s961_s22 = int_to_ptr.vmem [resolvable:$true] %s501_s22  ;;  %s734_s6 = int_to_ptr.vmem [resolvable:$false] %s733_s6 }
  0x1b   : > { %v248_v12 = vcombine.high %v246_v11, %v246_v11  ;;  %v250_v19 = vpack.c.bf16 %v246_v11, %v246_v11  ;;  %s729_s5 = scalar_lea.vmem %s961_s22, 128  ;;  %s735_s7 = scalar_lea.vmem %s734_s6, 256 }
  0x1c   : > { %630 = vmatpush3.bf16.msra.mxu0 %v719_v7  ;;  %p730_p12 = scmp.ne.s32.totalorder %s961_s22, %s729_s5  ;;  %p736_p1 = scmp.lt.s32.totalorder %s961_s22, %s734_s6 }
  0x1d   : > { %631 = vmatprep.subr.bf16.mxu0 %v720_v8  ;;  %v251_v14 = vpack.c.bf16 %v248_v12, %v248_v12  ;;  %p737_p2 = scmp.lt.s32.totalorder %s735_s7, %s729_s5 }
  0x1e   : > { %p731_p13 = pnand %p730_p12, %p878_p4 }
  0x1f   : > { %412 = vmatprep.mubr.bf16.mxu0 %v251_v14  ;;  %p738_p3 = por %p737_p2, %p736_p1 }
  0x20   : > { %632 = vmatpush3.bf16.msra.mxu0 %v721_v9  ;;  %p732_p0 = pneg %p731_p13 }
  0x21   : > { %633 = vmatprep.subr.bf16.mxu0 %v722_v10 }
  0x22   : > { %p739_p5 = pnand %p738_p3, %p732_p0 }
  0x24   : > { %634 = vmatpush3.bf16.msra.mxu0 %v723_v13 }
  0x25   : > { %635 = vmatprep.subr.bf16.mxu0 %v724_v15 }
  0x28   : > { %636 = vmatpush3.bf16.msra.mxu0 %v725_v16 }
  0x29   : > { %637 = vmatprep.subr.bf16.mxu0 %v726_v17 }
  0x2c   : > { %638 = vmatpush3.bf16.msra.mxu0 %v727_v18 }
  0x2f   : > { %413 = vmatmul.mubr.bf16.vlgmr.msra.gmra.mrb[0].mxu0 %v250_v19 }
  0x92   : > { %v482_v37 = vpop.permute.xlu0 %481 }
 0x102   : > { %v639_v23 = vpop.f32.mrb[0].mxu0 }
 0x103   : > { %v640_v24 = vpop.f32.mrb[1].mxu0 }
 0x104   : > { %v641_v25 = vadd.f32 %v640_v24, %v639_v23  ;;  %v642_v26 = vpop.f32.mrb[2].mxu0 }
 0x105   : > { %v643_v27 = vpop.f32.mrb[3].mxu0 }
 0x106   : > { %v422_v28 = vpack.c.bf16 %v641_v25, %v641_v25 }
 0x108   : > { %v429_v29 = vsel %vm427_vm2, %v422_v28, 0 }
 0x109   : > { %648 = vmatpush3.bf16.msra.mxu1 %v429_v29 }
 0x10c   : > { %650 = vmatmul.mubr.msk.bf16.vlgmr.msra.gmra.mrb[0].mxu1 %vm423_vm3, %v421_v30 }
 0x1df   : > { %v465_v32 = vpop.f32.mrb[0].mxu1 }
 0x1e0   : > { %v471_v33 = vadd.f32 %v465_v32, %v420_v31  ;;  %v651_v34 = vpop.f32.mrb[1].mxu1 }
 0x1e1   : > { %v468_v35 = vpop.f32.mrb[2].mxu1 }
 0x1e2   : > { %473 = vst.msk [vmem:[#allocation2] sm:$0xff] %vm244_vm0, %v471_v33  ;;  %v652_v36 = vpop.f32.mrb[3].mxu1 }
 0x1e9   : > { %v477_v38 = vld [vmem:[#allocation2] sm:$0xff] }
 0x1ea   : > { %v484_v39 = vadd.f32 %v482_v37, %v477_v38 }
 0x1ec   : > { %v485_v40 = vmax.f32 %v484_v39, 0.0 }
 0x1ee   : > { %486 = vst.msk [vmem:[%s225_s21] sm:$0xff] %vm244_vm0, %v485_v40 }
 0x1ef   : > { %742 = shalt.err (!%p739_p5)
}
 0x1f0   : > { %s743_s8 = scalar_lea.hbm %s959_s29, 128  ;;  %s747_s11 = scalar_lea.hbm %s1011_s4, 256 }
 0x1f1   : > { %p744_p6 = scmp.ne.s32.totalorder %s959_s29, %s743_s8  ;;  %p748_p10 = scmp.lt.u32.totalorder %s959_s29, %s1011_s4 }
 0x1f2   : > { %p749_p11 = scmp.lt.u32.totalorder %s747_s11, %s743_s8  ;;  %p751_p13 = scmp.lt.u32.totalorder %s743_s8, %s959_s29 }
 0x1f3   : > { %p745_p7 = pnand %p744_p6, %p878_p4 }
 0x1f4   : > { %p750_p12 = por %p749_p11, %p748_p10 }
 0x1f5   : > { %p746_p9 = pneg %p745_p7 }
 0x1f6   : > { %p752_p0 = por %p751_p13, %p750_p12 }
 0x1f8   : > { %p753_p1 = pnand %p752_p0, %p746_p9 }
 0x1fa   : > { %756 = shalt.err (!%p753_p1)
}
 0x1fb   : > { %653 = dma.vmem_to_hbm [thread:$0]  (%p878_p4), %s961_s22, 128, %s959_s29, %s488_s30  }
 0x1fc PF: > { %p659_p2 = scmp.ge.s32.totalorder %s807_s20, 2  ;;  %s513_s14 = sand.u32 1, %s787_s15  }
 0x1fd   : > { %s514_s21 = scalar_lea.sflag [#allocation4], %s513_s14 }
 0x1fe   : > { %p656_p3 = pnand %p659_p2, %p885_p8 }
 0x200   : > { %782 = dma.done.wait (!%p656_p3), %s514_s21, 128  }
 0x201   : > { %784 = vsyncadd (!%p656_p3), %s514_s21, 4294967168  ;;  %s17_s20 = sadd.s32 1, %s807_s20   ;;  %s1014_s15 = smov %s791_s16 }
 0x202   : > { %p14_p5 = scmp.ge.s32.totalorder %s17_s20, 4   ;;  %s1015_s16 = smov %s795_s17 }
 0x203   : > { %s1016_s17 = smov %s891_s28  ;;  %s1017_s18 = smov %s803_s19 }
 0x204   : > { %s1018_s19 = smov %s1020_s23  ;;  %16 = sbr.rel (!%p14_p5) target bundleno = 4 (0x4), region = 82 }
 0x20b   :  { %519 = vsyncpa [#allocation4], 1 }
 0x20c   :  { %521 = vsyncpa [#allocation4 + $0x1], 1 }

</bundles_post_ra>
